<compile_context>
chip_gen: v6e
topology: v6e:2x2x1
jax: 0.10.0
libtpu: 0.0.40
codegen_flags: <defaults>
</compile_context>

<pallas_src>
import jax
import jax.numpy as jnp
from jax.experimental import pallas as pl
from jax.experimental.pallas import tpu as pltpu

LN_EPS = 1e-5  # torch.nn.LayerNorm default


def residual_block_kernel(x_ref, gamma_ref, beta_ref,
                          w1_ref, b1_ref, w2_ref, b2_ref, o_ref):
    """One (TB, H) batch tile: LayerNorm -> fc1 -> ReLU -> fc2 -> +residual."""
    x = x_ref[...].astype(jnp.float32)               # (TB, H), f32 math for LN

    # Hoisted parameter loads: exactly one read / broadcast per grid step.
    gamma = gamma_ref[...]                            # (1, H)
    beta = beta_ref[...]
    b1 = b1_ref[...]
    b2 = b2_ref[...]

    # --- LayerNorm over last dim (biased variance, like torch).  rsqrt goes to
    # the EUP slot; reductions to the XLU — both off the VALU critical path. ---
    mean = jnp.mean(x, axis=-1, keepdims=True)
    xc = x - mean
    var = jnp.mean(xc * xc, axis=-1, keepdims=True)
    xn = xc * jax.lax.rsqrt(var + LN_EPS)
    xn = xn * gamma + beta

    # --- fc1 + ReLU (MXU, f32 accumulation).  If weights are stored in a low
    # precision dtype (e.g. bf16), downcast the LHS only at the dot boundary. ---
    w_dtype = w1_ref.dtype
    lhs1 = xn if w_dtype == jnp.float32 else xn.astype(w_dtype)
    h = jnp.dot(lhs1, w1_ref[...], preferred_element_type=jnp.float32) + b1
    h = jnp.maximum(h, 0.0)

    # --- fc2 (MXU) ---
    lhs2 = h if w_dtype == jnp.float32 else h.astype(w_dtype)
    y = jnp.dot(lhs2, w2_ref[...], preferred_element_type=jnp.float32) + b2

    # --- residual add with the pre-norm input ---
    o_ref[...] = (x + y).astype(o_ref.dtype)


def params_from_torch_layout(w1, b1, w2, b2, weight_dtype=None):
    """One-time conversion of PyTorch (out, in) Linear weights to the (in, out)
    layout the kernel consumes (done outside the hot path — no per-call
    transposes).  Optionally casts the weights (e.g. to bf16)."""
    w1_t, w2_t = w1.T, w2.T
    if weight_dtype is not None:
        w1_t = w1_t.astype(weight_dtype)
        w2_t = w2_t.astype(weight_dtype)
    return w1_t, b1, w2_t, b2


def residual_block(x, gamma, beta, w1_t, b1, w2_t, b2, *, block_b=256):
    """x: (..., H).  w1_t / w2_t must already be in (in, out) layout
    (use params_from_torch_layout once at setup)."""
    orig_shape = x.shape
    H = orig_shape[-1]
    assert w1_t.shape == (H, H) and w2_t.shape == (H, H), "weights must be (H, H)"
    x2d = x.reshape(-1, H)
    B = x2d.shape[0]

    # Batch tile: big tiles amortize the ~0.35us per-step overhead.  TB must be
    # a multiple of 8 (sublane) unless it equals the full (flattened) batch.
    TB = B if B <= block_b else max(8, (block_b // 8) * 8)
    grid = (pl.cdiv(B, TB),)

    # VMEM budget: double-buffered x/out tiles + resident weights + f32 temps.
    x_bytes = jnp.dtype(x.dtype).itemsize
    w_bytes = jnp.dtype(w1_t.dtype).itemsize
    est = (2 * 2 * TB * H * x_bytes        # x + out, double-buffered
           + 2 * H * H * w_bytes           # two resident weight matrices
           + 6 * TB * H * 4                # f32 intermediates (x, xn, h, y, ...)
           + 8 * H * 4)                    # LN params + biases
    vmem_limit = int(min(64 * 2**20, max(32 * 2**20, 2 * est)))
    # TODO(synk): for very large H, chunk the contraction dim of both dots with
    # a VMEM f32 accumulator instead of keeping both full (H, H) weights resident.

    tile = pl.BlockSpec((TB, H), lambda i: (i, 0))                 # streamed
    resident = lambda shape: pl.BlockSpec(shape, lambda i: (0, 0))  # fetched once

    out2d = pl.pallas_call(
        residual_block_kernel,
        out_shape=jax.ShapeDtypeStruct((B, H), x.dtype),
        grid=grid,
        in_specs=[
            tile,                 # x
            resident((1, H)),     # gamma
            resident((1, H)),     # beta
            resident((H, H)),     # w1 (in, out)
            resident((1, H)),     # b1
            resident((H, H)),     # w2 (in, out)
            resident((1, H)),     # b2
        ],
        out_specs=tile,
        compiler_params=pltpu.CompilerParams(
            dimension_semantics=("parallel",),   # megacore sharding
            vmem_limit_bytes=vmem_limit),
    )(x2d, gamma.reshape(1, H), beta.reshape(1, H),
      w1_t, b1.reshape(1, H), w2_t, b2.reshape(1, H))
    return out2d.reshape(orig_shape)


def xavier_uniform(key, out_dim, in_dim, gain=1.0, dtype=jnp.float32):
    # matches torch.nn.init.xavier_uniform_ for a (out, in) Linear weight
    limit = gain * jnp.sqrt(6.0 / (in_dim + out_dim))
    return jax.random.uniform(key, (out_dim, in_dim), dtype=dtype,
                              minval=-limit, maxval=limit)


def reference(x, gamma, beta, w1, b1, w2, b2):
    # pure-JAX reference, weights in PyTorch (out, in) layout
    mean = jnp.mean(x, axis=-1, keepdims=True)
    var = jnp.mean((x - mean) ** 2, axis=-1, keepdims=True)
    xn = (x - mean) / jnp.sqrt(var + LN_EPS) * gamma + beta
    h = jnp.maximum(xn @ w1.T + b1, 0.0)
    return x + (h @ w2.T + b2)


if __name__ == "__main__":
    # H = 128 keeps the lane dim dense; B = 256 split into 128-row tiles gives
    # a 2-step grid that exercises the streaming pipeline with resident weights.
    B, H = 256, 128
    key = jax.random.PRNGKey(0)
    kx, k1, k2 = jax.random.split(key, 3)

    x = jax.random.normal(kx, (B, H), dtype=jnp.float32)

    # LayerNorm params: torch defaults (ones / zeros)
    gamma = jnp.ones((H,), jnp.float32)
    beta = jnp.zeros((H,), jnp.float32)

    # Linear params: xavier_uniform weights (PyTorch (out, in) layout), zero biases
    w1 = xavier_uniform(k1, H, H)
    b1 = jnp.zeros((H,), jnp.float32)
    w2 = xavier_uniform(k2, H, H)
    b2 = jnp.zeros((H,), jnp.float32)

    # One-time layout conversion outside the hot path (no per-call transposes).
    w1_t, b1_k, w2_t, b2_k = params_from_torch_layout(w1, b1, w2, b2)

    out = residual_block(x, gamma, beta, w1_t, b1_k, w2_t, b2_k, block_b=128)
    out = jax.block_until_ready(out)

    ref = reference(x, gamma, beta, w1, b1, w2, b2)
    assert out.shape == (B, H)
    assert jnp.allclose(out, ref, atol=2e-4, rtol=2e-4), "mismatch vs reference"

    print("KERNEL_OK")
</pallas_src>

<mosaic_0001>
module attributes {stable_mosaic.version = 11 : i64} {
  func.func @residual_block_kernel(%arg0: i32, %arg1: memref<128x128xf32, #tpu.memory_space<vmem>>, %arg2: memref<1x128xf32, #tpu.memory_space<vmem>>, %arg3: memref<1x128xf32, #tpu.memory_space<vmem>>, %arg4: memref<128x128xf32, #tpu.memory_space<vmem>>, %arg5: memref<1x128xf32, #tpu.memory_space<vmem>>, %arg6: memref<128x128xf32, #tpu.memory_space<vmem>>, %arg7: memref<1x128xf32, #tpu.memory_space<vmem>>, %arg8: memref<128x128xf32, #tpu.memory_space<vmem>>) attributes {dimension_semantics = [#tpu.dimension_semantics<parallel>], iteration_bounds = array<i64: 2>, scalar_prefetch = 0 : i64, scratch_operands = 0 : i64, tpu.core_type = #tpu.core_type<tc>, window_params = [{transform_indices = @transform_0, window_bounds = array<i64: 128, 128>}, {pipeline_mode = #tpu.pipeline_mode<synchronous>, transform_indices = @transform_1, window_bounds = array<i64: 1, 128>}, {pipeline_mode = #tpu.pipeline_mode<synchronous>, transform_indices = @transform_2, window_bounds = array<i64: 1, 128>}, {pipeline_mode = #tpu.pipeline_mode<synchronous>, transform_indices = @transform_3, window_bounds = array<i64: 128, 128>}, {pipeline_mode = #tpu.pipeline_mode<synchronous>, transform_indices = @transform_4, window_bounds = array<i64: 1, 128>}, {pipeline_mode = #tpu.pipeline_mode<synchronous>, transform_indices = @transform_5, window_bounds = array<i64: 128, 128>}, {pipeline_mode = #tpu.pipeline_mode<synchronous>, transform_indices = @transform_6, window_bounds = array<i64: 1, 128>}, {transform_indices = @transform_7, window_bounds = array<i64: 128, 128>}]} {
    %c0 = arith.constant 0 : index
    %c0_0 = arith.constant 0 : index
    %0 = vector.load %arg1[%c0, %c0_0] : memref<128x128xf32, #tpu.memory_space<vmem>>, vector<128x128xf32>
    %c0_1 = arith.constant 0 : index
    %c0_2 = arith.constant 0 : index
    %1 = vector.load %arg2[%c0_1, %c0_2] : memref<1x128xf32, #tpu.memory_space<vmem>>, vector<1x128xf32>
    %c0_3 = arith.constant 0 : index
    %c0_4 = arith.constant 0 : index
    %2 = vector.load %arg3[%c0_3, %c0_4] : memref<1x128xf32, #tpu.memory_space<vmem>>, vector<1x128xf32>
    %c0_5 = arith.constant 0 : index
    %c0_6 = arith.constant 0 : index
    %3 = vector.load %arg5[%c0_5, %c0_6] : memref<1x128xf32, #tpu.memory_space<vmem>>, vector<1x128xf32>
    %c0_7 = arith.constant 0 : index
    %c0_8 = arith.constant 0 : index
    %4 = vector.load %arg7[%c0_7, %c0_8] : memref<1x128xf32, #tpu.memory_space<vmem>>, vector<1x128xf32>
    %cst = arith.constant dense<0.000000e+00> : vector<128xf32>
    %5 = vector.multi_reduction <add>, %0, %cst [1] : vector<128x128xf32> to vector<128xf32>
    %6 = vector.shape_cast %5 : vector<128xf32> to vector<128x1xf32>
    %cst_9 = arith.constant 1.280000e+02 : f32
    %7 = vector.broadcast %cst_9 : f32 to vector<128x1xf32>
    %8 = arith.divf %6, %7 : vector<128x1xf32>
    %9 = vector.broadcast %8 : vector<128x1xf32> to vector<128x128xf32>
    %10 = arith.subf %0, %9 : vector<128x128xf32>
    %11 = arith.mulf %10, %10 : vector<128x128xf32>
    %cst_10 = arith.constant dense<0.000000e+00> : vector<128xf32>
    %12 = vector.multi_reduction <add>, %11, %cst_10 [1] : vector<128x128xf32> to vector<128xf32>
    %13 = vector.shape_cast %12 : vector<128xf32> to vector<128x1xf32>
    %cst_11 = arith.constant 1.280000e+02 : f32
    %14 = vector.broadcast %cst_11 : f32 to vector<128x1xf32>
    %15 = arith.divf %13, %14 : vector<128x1xf32>
    %cst_12 = arith.constant 9.99999974E-6 : f32
    %16 = vector.broadcast %cst_12 : f32 to vector<128x1xf32>
    %17 = arith.addf %15, %16 : vector<128x1xf32>
    %18 = math.rsqrt %17 : vector<128x1xf32>
    %19 = vector.broadcast %18 : vector<128x1xf32> to vector<128x128xf32>
    %20 = arith.mulf %10, %19 : vector<128x128xf32>
    %21 = vector.broadcast %1 : vector<1x128xf32> to vector<128x128xf32>
    %22 = arith.mulf %20, %21 : vector<128x128xf32>
    %23 = vector.broadcast %2 : vector<1x128xf32> to vector<128x128xf32>
    %24 = arith.addf %22, %23 : vector<128x128xf32>
    %c0_13 = arith.constant 0 : index
    %c0_14 = arith.constant 0 : index
    %25 = vector.load %arg4[%c0_13, %c0_14] : memref<128x128xf32, #tpu.memory_space<vmem>>, vector<128x128xf32>
    %cst_15 = arith.constant dense<0.000000e+00> : vector<128x128xf32>
    %26 = tpu.matmul %24, %25, %cst_15 {dimension_numbers = #tpu.dot_dimension_numbers<[1], [0], [0], [1], [0, 0, 1, 1], [], []>} : vector<128x128xf32>, vector<128x128xf32>, vector<128x128xf32> -> vector<128x128xf32>
    %27 = vector.broadcast %3 : vector<1x128xf32> to vector<128x128xf32>
    %28 = arith.addf %26, %27 : vector<128x128xf32>
    %cst_16 = arith.constant 0.000000e+00 : f32
    %29 = vector.broadcast %cst_16 : f32 to vector<128x128xf32>
    %30 = arith.maximumf %28, %29 : vector<128x128xf32>
    %c0_17 = arith.constant 0 : index
    %c0_18 = arith.constant 0 : index
    %31 = vector.load %arg6[%c0_17, %c0_18] : memref<128x128xf32, #tpu.memory_space<vmem>>, vector<128x128xf32>
    %cst_19 = arith.constant dense<0.000000e+00> : vector<128x128xf32>
    %32 = tpu.matmul %30, %31, %cst_19 {dimension_numbers = #tpu.dot_dimension_numbers<[1], [0], [0], [1], [0, 0, 1, 1], [], []>} : vector<128x128xf32>, vector<128x128xf32>, vector<128x128xf32> -> vector<128x128xf32>
    %33 = vector.broadcast %4 : vector<1x128xf32> to vector<128x128xf32>
    %34 = arith.addf %32, %33 : vector<128x128xf32>
    %35 = arith.addf %0, %34 : vector<128x128xf32>
    %c0_20 = arith.constant 0 : index
    %c0_21 = arith.constant 0 : index
    %36 = vector.load %arg8[%c0_20, %c0_21] : memref<128x128xf32, #tpu.memory_space<vmem>>, vector<128x128xf32>
    tpu.vector_store %arg8[%c0_20, %c0_21], %35 {strides = array<i32>} : memref<128x128xf32, #tpu.memory_space<vmem>>, vector<128x128xf32>,
    return
  }
  func.func @transform_0(%arg0: i32) -> (i32, i32) {
    %c0_i32 = arith.constant 0 : i32
    %c0_i32_0 = arith.constant 0 : i32
    return %arg0, %c0_i32 : i32, i32
  }
  func.func @transform_1(%arg0: i32) -> (i32, i32) {
    %c0_i32 = arith.constant 0 : i32
    %c0_i32_0 = arith.constant 0 : i32
    %c0_i32_1 = arith.constant 0 : i32
    return %c0_i32, %c0_i32_0 : i32, i32
  }
  func.func @transform_2(%arg0: i32) -> (i32, i32) {
    %c0_i32 = arith.constant 0 : i32
    %c0_i32_0 = arith.constant 0 : i32
    %c0_i32_1 = arith.constant 0 : i32
    return %c0_i32, %c0_i32_0 : i32, i32
  }
  func.func @transform_3(%arg0: i32) -> (i32, i32) {
    %c0_i32 = arith.constant 0 : i32
    %c0_i32_0 = arith.constant 0 : i32
    %c0_i32_1 = arith.constant 0 : i32
    return %c0_i32, %c0_i32_0 : i32, i32
  }
  func.func @transform_4(%arg0: i32) -> (i32, i32) {
    %c0_i32 = arith.constant 0 : i32
    %c0_i32_0 = arith.constant 0 : i32
    %c0_i32_1 = arith.constant 0 : i32
    return %c0_i32, %c0_i32_0 : i32, i32
  }
  func.func @transform_5(%arg0: i32) -> (i32, i32) {
    %c0_i32 = arith.constant 0 : i32
    %c0_i32_0 = arith.constant 0 : i32
    %c0_i32_1 = arith.constant 0 : i32
    return %c0_i32, %c0_i32_0 : i32, i32
  }
  func.func @transform_6(%arg0: i32) -> (i32, i32) {
    %c0_i32 = arith.constant 0 : i32
    %c0_i32_0 = arith.constant 0 : i32
    %c0_i32_1 = arith.constant 0 : i32
    return %c0_i32, %c0_i32_0 : i32, i32
  }
  func.func @transform_7(%arg0: i32) -> (i32, i32) {
    %c0_i32 = arith.constant 0 : i32
    %c0_i32_0 = arith.constant 0 : i32
    return %arg0, %c0_i32 : i32, i32
  }
}

</mosaic_0001>

<bundles_post_ra>
// kernel: tpu_custom_call.1
= control target key start
LH: loop header
LB: loop body
LE: loop exit
PB: predicated region body
PF: predicated region fallthrough
CT: control target
= control target key end

     0   :  { %s2022_s0 = inlined_call_operand.hbm [shape: f32[256,128], index: 0, kind: input, shape index: {}]   ;;  %s2023_s1 = inlined_call_operand.vmem [shape: f32[1,128], index: 1, kind: input, shape index: {}]   ;;  %s2024_s2 = inlined_call_operand.vmem [shape: f32[1,128], index: 2, kind: input, shape index: {}]   ;;  %s2025_s3 = inlined_call_operand.hbm [shape: f32[128,128], index: 3, kind: input, shape index: {}]   ;;  %s2026_s4 = inlined_call_operand.vmem [shape: f32[1,128], index: 4, kind: input, shape index: {}]   ;;  %s2027_s5 = inlined_call_operand.hbm [shape: f32[128,128], index: 5, kind: input, shape index: {}]   ;;  %s2028_s6 = inlined_call_operand.vmem [shape: f32[1,128], index: 6, kind: input, shape index: {}]   ;;  %s2029_s7 = inlined_call_operand.hbm [shape: f32[256,128], index: 7, kind: output, shape index: {}]  }
   0x1   :  { %2036 = sst [smem:[#allocation12_spill]] %s2025_s3 }
   0x2   :  { %12 = vsyncpa [#allocation3], 0 }
   0x3   :  { %14 = vsyncpa [#allocation3 + $0x1], 0 }
   0x4   :  { %15 = vsyncpa [#allocation6], 0 }
   0x5   :  { %16 = vsyncpa [#allocation4], 0 }
   0x6   :  { %18 = vsyncpa [#allocation4 + $0x1], 0  ;;  %s1558_s24 = smov 0   ;;  %s1560_s25 = smov 0  }
   0x7   :  { %s1562_s26 = smov 0   ;;  %s1564_s27 = smov 0  }
   0x8 LB: > { %s1579_s28 = sadd.s32 4294967295, %s1508_s27   ;;  %s1057_s29 = sadd.s32 4294967294, %s1508_s27   ;;  %s1508_s27 = sphi %s1564_s27, %s2056_s27   ;;  %s1504_s26 = sphi %s1562_s26, %s2055_s26   ;;  %s1500_s25 = sphi %s1560_s25, %s2054_s25   ;;  %s1496_s24 = sphi %s1558_s24, %s2053_s24  }
   0x9   : > { %p44_p0 = scmp.ne.s32.totalorder %s1500_s25, %s1496_s24  ;;  %p2031_p1 = scmp.eq.s32.totalorder %s1579_s28, 0 }
   0xa   : > { %p194_p2 = scmp.eq.s32.totalorder %s1579_s28, 1  ;;  %p200_p3 = scmp.eq.s32.totalorder %s1057_s29, 1 }
   0xb   : > { %p1588_p4 = por %p2031_p1, %p44_p0  ;;  %p1058_p5 = scmp.ge.s32.totalorder %s1508_s27, 1 }
   0xc   : > { %p1593_p6 = por %p200_p3, %p44_p0  ;;  %p207_p7 = scmp.lt.s32.totalorder %s1508_s27, 3 }
   0xd   : > { %s2037_s30 = scalar_select %p1588_p4, 1, 0 }
   0xe   : > { %s2038_s8 = scalar_select %p1593_p6, 1, 0 }
   0xf   : > { %p1598_p8 = pnand %p1058_p5, %p207_p7  ;;  %s1510_s10 = smov [#allocation5]  }
  0x10   : > { %s225_s11 = sshll.u32 %s1510_s10, 4  ;;  %s1511_s13 = smov [#allocation7]   ;;  %s226_s11 = int_to_ptr.vmem [resolvable:$true] %s225_s11 }
  0x11   : > { %s2039_s9 = scalar_select %p1598_p8, 1, 0 }
  0x12   : > { %p1269_p9 = pneg %p1598_p8  ;;  %s241_s14 = sshll.u32 %s1511_s13, 4  ;;  %s242_s14 = int_to_ptr.vmem [resolvable:$true] %s241_s14 }
  0x13   : > { %s1371_s15 = scalar_lea.vmem %s226_s11, 2048  ;;  %p1379_p5 = scmp.lt.s32.totalorder %s226_s11, %s226_s11 }
  0x14   : > { %p1607_p11 = pnand %p1269_p9, %p2031_p1  ;;  %p1372_p13 = scmp.ne.s32.totalorder %s226_s11, %s1371_s15 }
  0x15   : > { %p1380_p7 = scmp.lt.s32.totalorder %s1371_s15, %s1371_s15 }
  0x16   : > { %p1362_p12 = pneg %p1607_p11 }
  0x17   : > { %p1381_p10 = por %p1380_p7, %p1379_p5 }
  0x18   : > { %p1374_p0 = pnand %p1372_p13, %p1362_p12 }
  0x1a   : > { %p1375_p3 = pneg %p1374_p0 }
  0x1c   : > { %p1382_p9 = pnand %p1381_p10, %p1375_p3 }
  0x1e   : > { %1385 = shalt.err (!%p1382_p9)
}
  0x1f   : > { %s2030_s16 = smov 128   ;;  %s2032_s17 = smov 8  }
  0x20   : > { %s2041_s3 = sld [smem:[#allocation12_spill]]  ;;  %s1397_s20 = scalar_lea.vmem %s242_s14, 2048 }
  0x21   : > { %p1398_p13 = scmp.ne.s32.totalorder %s242_s14, %s1397_s20  ;;  %p1405_p10 = scmp.lt.s32.totalorder %s242_s14, %s242_s14 }
  0x22   : > { %p1406_p3 = scmp.lt.s32.totalorder %s1397_s20, %s1397_s20 }
  0x23   : > { %p1400_p0 = pnand %p1398_p13, %p1362_p12 }
  0x24   : > { %p1407_p7 = por %p1406_p3, %p1405_p10 }
  0x25   : > { %p1401_p5 = pneg %p1400_p0 }
  0x26   : > { %1272 = dma.hbm_to_vmem [thread:$0]  (!%p1607_p11), %s2041_s3, 2048, %s226_s11, [#allocation6], %s2030_s16, %s2030_s16, %s2032_s17  }
  0x27   : > { %p1408_p9 = pnand %p1407_p7, %p1401_p5 }
  0x29   : > { %1411 = shalt.err (!%p1408_p9)
}
  0x2a   : > { %1275 = dma.hbm_to_vmem [thread:$0]  (!%p1607_p11), %s2027_s5, 2048, %s242_s14, [#allocation6], %s2030_s16, %s2030_s16, %s2032_s17  }
  0x2b   : > { %s1636_s23 = sadd.s32 1, %s1508_s27   ;;  %s31_s29 = sadd.s32 1, %s1504_s26 }
  0x2c   : > { %s28_s10 = ssub.s32 %s1508_s27, %s1636_s23  ;;  %p38_p12 = scmp.ne.s32.totalorder %s1504_s26, %s1500_s25 }
  0x2d   : > { %p29_p13 = scmp.eq.s32.totalorder %s28_s10, 0  ;;  %p39_p0 = scmp.eq.s32.totalorder %s1508_s27, 0 }
  0x2e   : > { %p1646_p5 = por %p194_p2, %p38_p12  ;;  %p1286_p10 = scmp.lt.s32.totalorder %s1508_s27, 2 }
  0x2f   : > { %s1652_s12 = scalar_select %p29_p13, %s1504_s26, %s31_s29  }
  0x30   : > { %s2042_s11 = scalar_select %p1646_p5, 1, 0 }
  0x31   : > { %p40_p3 = por %p39_p0, %p38_p12  ;;  %s258_s13 = sand.u32 1, %s1504_s26  }
  0x32   : > { %s1062_s15 = sshll.u32 %s258_s13, 7  ;;  %s1079_s14 = sshll.u32 %s1508_s27, 11 }
  0x33   : > { %s1659_s20 = scalar_lea.hbm %s2022_s0, %s1079_s14  ;;  %s262_s21 = scalar_lea.vmem [#allocation2], %s1062_s15 }
  0x34   : > { %s269_s22 = sshll.u32 %s262_s21, 4  ;;  %p1663_p2 = pnand %p1286_p10, %p40_p3  ;;  %s1661_s22 = int_to_ptr.vmem [resolvable:$true] %s269_s22 }
  0x35   : > { %s1667_s29 = scalar_lea.sflag [#allocation3], %s258_s13  ;;  %s1412_s16 = scalar_lea.hbm %s1659_s20, 2048 }
  0x36   : > { %p1413_p11 = scmp.ne.s32.totalorder %s1659_s20, %s1412_s16  ;;  %p1414_p7 = pneg %p1663_p2 }
  0x37   : > { %s1417_s15 = scalar_lea.hbm %s2022_s0, 4096  ;;  %p1418_p13 = scmp.lt.s32.totalorder %s1659_s20, %s2022_s0 }
  0x38   : > { %p1415_p9 = pnand %p1414_p7, %p1413_p11  ;;  %p1419_p0 = scmp.lt.s32.totalorder %s1417_s15, %s1412_s16 }
  0x3a   : > { %p1416_p12 = pneg %p1415_p9  ;;  %p1420_p10 = por %p1419_p0, %p1418_p13 }
  0x3c   : > { %p1421_p3 = pnand %p1420_p10, %p1416_p12 }
  0x3e   : > { %1424 = shalt.err (!%p1421_p3)
}
  0x3f   : > { %s1425_s13 = scalar_lea.vmem %s1661_s22, 2048  ;;  %s1514_s17 = smov [#allocation2]  }
  0x40   : > { %p1426_p1 = scmp.ne.s32.totalorder %s1661_s22, %s1425_s13  ;;  %s1430_s3 = sshll.u32 %s1514_s17, 4  ;;  %s1431_s3 = int_to_ptr.vmem [resolvable:$false] %s1430_s3 }
  0x41   : > { %s1432_s14 = scalar_lea.vmem %s1431_s3, 4096  ;;  %p1433_p9 = scmp.lt.s32.totalorder %s1661_s22, %s1431_s3 }
  0x42   : > { %p1428_p6 = pnand %p1426_p1, %p1414_p7  ;;  %p1434_p5 = scmp.lt.s32.totalorder %s1432_s14, %s1425_s13 }
  0x44   : > { %p1429_p11 = pneg %p1428_p6  ;;  %p1435_p4 = por %p1434_p5, %p1433_p9 }
  0x46   : > { %p1436_p8 = pnand %p1435_p4, %p1429_p11 }
  0x48   : > { %1439 = shalt.err (!%p1436_p8)
}
  0x49   : > { %s2044_s16 = smov 8   ;;  %s2045_s18 = smov 128  }
  0x4a   : > { %1279 = dma.hbm_to_vmem [thread:$0]  (!%p1663_p2), %s1659_s20, 2048, %s1661_s22, %s1667_s29, %s2045_s18, %s2045_s18, %s2044_s16  }
  0x4b   : > { %p2046_p1 = scmp.ne.s32.totalorder %s2039_s9, 0 }
  0x4c   : > { %s1694_s17 = sand.u32 (!%p2046_p1), 1, %s1500_s25   ;;  %p2047_p4 = scmp.ne.s32.totalorder (!%p2046_p1), %s2037_s30, 0 }
  0x4d   : > { %281 = sbr.rel (%p2046_p1) target bundleno = 838 (0x346), region = 48  ;;  %s1066_s3 = sshll.u32 (!%p2046_p1), %s1694_s17, 7 }
  0x4e   : > { %s284_s15 = scalar_lea.sflag (!%p2046_p1), [#allocation3], %s1694_s17  ;;  %s1700_s10 = scalar_lea.vmem (!%p2046_p1), [#allocation2], %s1066_s3 }
  0x52   : > { %1483 = dma.done.wait (%p2047_p4), %s284_s15, 2048  }
  0x53   : > { %1485 = vsyncadd (%p2047_p4), %s284_s15, 4294965248  ;;  %p2048_p6 = scmp.eq.s32.totalorder %s1579_s28, 0 }
  0x55   : > { %1487 = dma.done.wait (%p2048_p6), [#allocation6], 4096   ;;  %p2049_p8 = pmov %p2048_p6 }
  0x56   : > { %v1711_v0 = vld [vmem:[%s1700_s10] sm:$0xff]  ;;  %v1714_v1 = vld [vmem:[%s1700_s10 + $0x10] sm:$0xff]  ;;  %v1719_v2 = vld [vmem:[%s1700_s10 + $0x8] sm:$0xff]  ;;  %s1925_s14 = scalar_lea.vmem [#allocation8], %s1066_s3  ;;  %s1080_s16 = sshll.u32 %s1579_s28, 11 }
  0x57   : > { %1489 = vsyncadd (%p2049_p8), [#allocation6], 4294963200  ;;  %348 = vadd.xlane.f32.xlu0 %v1711_v0  ;;  %352 = vadd.xlane.f32.xlu1 %v1714_v1  ;;  %v1722_v3 = vld [vmem:[%s1700_s10 + $0x18] sm:$0xff]  ;;  %v1727_v4 = vld [vmem:[%s1700_s10 + $0x20] sm:$0xff]  ;;  %s965_s18 = sshll.u32 %s1925_s14, 4  ;;  %s952_s28 = scalar_lea.sflag [#allocation4], %s1694_s17  ;;  %s1976_s18 = int_to_ptr.vmem [resolvable:$true] %s965_s18 }
  0x58   : > { %v1730_v5 = vld [vmem:[%s1700_s10 + $0x28] sm:$0xff]  ;;  %v1735_v6 = vld [vmem:[%s1700_s10 + $0x30] sm:$0xff]  ;;  %v1738_v7 = vld [vmem:[%s1700_s10 + $0x38] sm:$0xff]  ;;  %s1440_s30 = scalar_lea.vmem %s1976_s18, 2048  ;;  %p2050_p2 = scmp.ne.s32.totalorder %s2042_s11, 0 }
  0x59   : > { %v1743_v8 = vld [vmem:[%s1700_s10 + $0x40] sm:$0xff]  ;;  %v1746_v9 = vld [vmem:[%s1700_s10 + $0x48] sm:$0xff]  ;;  %v1751_v10 = vld [vmem:[%s1700_s10 + $0x50] sm:$0xff]  ;;  %p1441_p5 = scmp.ne.s32.totalorder %s1976_s18, %s1440_s30  ;;  %s1515_s9 = smov [#allocation8]  }
  0x5a   : > { %v1754_v11 = vld [vmem:[%s1700_s10 + $0x58] sm:$0xff]  ;;  %v1759_v12 = vld [vmem:[%s1700_s10 + $0x60] sm:$0xff]  ;;  %v1762_v13 = vld [vmem:[%s1700_s10 + $0x68] sm:$0xff]  ;;  %s1444_s20 = sshll.u32 %s1515_s9, 4  ;;  %s1445_s20 = int_to_ptr.vmem [resolvable:$false] %s1444_s20 }
  0x5b   : > { %350 = vadd.xlane.f32.xlu0 %v1719_v2  ;;  %354 = vadd.xlane.f32.xlu1 %v1722_v3  ;;  %v1767_v14 = vld [vmem:[%s1700_s10 + $0x70] sm:$0xff]  ;;  %v1770_v15 = vld [vmem:[%s1700_s10 + $0x78] sm:$0xff]  ;;  %v582_v50 = vld [vmem:[#allocation5 + $0x68] sm:$0xff]  ;;  %s1974_s10 = scalar_lea.hbm %s2029_s7, %s1080_s16  ;;  %p1442_p7 = pnand %p1441_p5, %p2050_p2 }
  0x5c   : > { %v584_v16 = vld [vmem:[#allocation5 + $0x78] sm:$0xff]  ;;  %v583_v17 = vld [vmem:[#allocation5 + $0x70] sm:$0xff]  ;;  %v581_v54 = vld [vmem:[#allocation5 + $0x60] sm:$0xff]  ;;  %s1446_s22 = scalar_lea.vmem %s1445_s20, 4096  ;;  %p1447_p13 = scmp.lt.s32.totalorder %s1976_s18, %s1445_s20 }
  0x5d   : > { %1145 = vmatprep.subr.mxu0 %v584_v16  ;;  %v580_v63 = vld [vmem:[#allocation5 + $0x58] sm:$0xff]  ;;  %p1443_p12 = pneg %p1442_p7  ;;  %p1448_p0 = scmp.lt.s32.totalorder %s1446_s22, %s1440_s30 }
  0x5e   : > { %1146 = vmatpush3.msra.mxu0 %v584_v16 }
  0x5f   : > { %356 = vadd.xlane.f32.xlu0 %v1727_v4  ;;  %358 = vadd.xlane.f32.xlu1 %v1730_v5  ;;  %p1449_p10 = por %p1448_p0, %p1447_p13 }
  0x60   : > { %1147 = vmatprep.subr.mxu0 %v583_v17 }
  0x61   : > { %1148 = vmatpush3.msra.mxu0 %v583_v17  ;;  %p1450_p3 = pnand %p1449_p10, %p1443_p12 }
  0x62   : > { %1149 = vmatprep.subr.mxu0 %v582_v50 }
  0x63   : > { %360 = vadd.xlane.f32.xlu0 %v1735_v6  ;;  %362 = vadd.xlane.f32.xlu1 %v1738_v7 }
  0x64   : > { %1150 = vmatpush3.msra.mxu0 %v582_v50  ;;  %v574_v50 = vld [vmem:[#allocation5 + $0x28] sm:$0xff] }
  0x65   : > { %1151 = vmatprep.subr.mxu0 %v581_v54 }
  0x66   : > { %1152 = vmatpush3.msra.mxu0 %v581_v54  ;;  %v570_v54 = vld [vmem:[#allocation5 + $0x8] sm:$0xff] }
  0x67   : > { %364 = vadd.xlane.f32.xlu0 %v1743_v8  ;;  %366 = vadd.xlane.f32.xlu1 %v1746_v9 }
  0x68   : > { %1153 = vmatprep.subr.mxu0 %v580_v63 }
  0x69   : > { %1154 = vmatpush3.msra.mxu0 %v580_v63  ;;  %v762_v63 = vld [vmem:[#allocation7 + $0x50] sm:$0xff] }
  0x6b   : > { %368 = vadd.xlane.f32.xlu0 %v1751_v10  ;;  %370 = vadd.xlane.f32.xlu1 %v1754_v11 }
  0x6f   : > { %372 = vadd.xlane.f32.xlu0 %v1759_v12  ;;  %374 = vadd.xlane.f32.xlu1 %v1762_v13 }
  0x73   : > { %376 = vadd.xlane.f32.xlu0 %v1767_v14  ;;  %378 = vadd.xlane.f32.xlu1 %v1770_v15 }
  0xe0   : > { %v349_v18 = vpop.xlane.xlu0 %348  ;;  %v353_v19 = vpop.xlane.xlu1 %352 }
  0xe1   : > { %v381_v20 = vmul.f32 0.0078125, %v349_v18  ;;  %v383_v21 = vmul.f32 0.0078125, %v353_v19  ;;  %v579_v19 = vld [vmem:[#allocation5 + $0x50] sm:$0xff] }
  0xe2   : > { %1155 = vmatprep.subr.mxu0 %v579_v19 }
  0xe3   : > { %v1775_v22 = vsub.f32 %v1711_v0, %v381_v20  ;;  %v1778_v23 = vsub.f32 %v1714_v1, %v383_v21  ;;  %1156 = vmatpush3.msra.mxu0 %v579_v19  ;;  %v760_v19 = vld [vmem:[#allocation7 + $0x40] sm:$0xff] }
  0xe4   : > { %v351_v24 = vpop.xlane.xlu0 %350  ;;  %v355_v25 = vpop.xlane.xlu1 %354 }
  0xe5   : > { %v382_v26 = vmul.f32 0.0078125, %v351_v24  ;;  %v413_v27 = vmul.f32 %v1775_v22, %v1775_v22  ;;  %v384_v28 = vmul.f32 0.0078125, %v355_v25  ;;  %v415_v31 = vmul.f32 %v1778_v23, %v1778_v23 }
  0xe7   : > { %v1783_v29 = vsub.f32 %v1719_v2, %v382_v26  ;;  %429 = vadd.xlane.f32.xlu0 %v413_v27  ;;  %v1786_v30 = vsub.f32 %v1722_v3, %v384_v28  ;;  %v578_v27 = vld [vmem:[#allocation5 + $0x48] sm:$0xff] }
  0xe8   : > { %v357_v32 = vpop.xlane.xlu0 %356  ;;  %v359_v33 = vpop.xlane.xlu1 %358  ;;  %1157 = vmatprep.subr.mxu0 %v578_v27 }
  0xe9   : > { %v385_v34 = vmul.f32 0.0078125, %v357_v32  ;;  %v414_v35 = vmul.f32 %v1783_v29, %v1783_v29  ;;  %v386_v36 = vmul.f32 0.0078125, %v359_v33  ;;  %v416_v39 = vmul.f32 %v1786_v30, %v1786_v30  ;;  %v577_v33 = vld [vmem:[#allocation5 + $0x40] sm:$0xff]  ;;  %1158 = vmatpush3.msra.mxu0 %v578_v27 }
  0xea   : > { %1159 = vmatprep.subr.mxu0 %v577_v33 }
  0xeb   : > { %v1793_v37 = vsub.f32 %v1727_v4, %v385_v34  ;;  %433 = vadd.xlane.f32.xlu0 %v415_v31  ;;  %431 = vadd.xlane.f32.xlu1 %v414_v35  ;;  %v1796_v38 = vsub.f32 %v1730_v5, %v386_v36 }
  0xec   : > { %v361_v40 = vpop.xlane.xlu0 %360  ;;  %v363_v41 = vpop.xlane.xlu1 %362  ;;  %1160 = vmatpush3.msra.mxu0 %v577_v33 }
  0xed   : > { %v387_v42 = vmul.f32 0.0078125, %v361_v40  ;;  %v417_v43 = vmul.f32 %v1793_v37, %v1793_v37  ;;  %v388_v44 = vmul.f32 0.0078125, %v363_v41  ;;  %v418_v47 = vmul.f32 %v1796_v38, %v1796_v38  ;;  %v576_v41 = vld [vmem:[#allocation5 + $0x38] sm:$0xff] }
  0xee   : > { %1161 = vmatprep.subr.mxu0 %v576_v41 }
  0xef   : > { %v1803_v45 = vsub.f32 %v1735_v6, %v387_v42  ;;  %435 = vadd.xlane.f32.xlu1 %v416_v39  ;;  %437 = vadd.xlane.f32.xlu0 %v417_v43  ;;  %v1806_v46 = vsub.f32 %v1738_v7, %v388_v44 }
  0xf0   : > { %v365_v48 = vpop.xlane.xlu0 %364  ;;  %v367_v49 = vpop.xlane.xlu1 %366  ;;  %1162 = vmatpush3.msra.mxu0 %v576_v41 }
  0xf1   : > { %v389_v51 = vmul.f32 0.0078125, %v365_v48  ;;  %v419_v52 = vmul.f32 %v1803_v45, %v1803_v45  ;;  %v390_v53 = vmul.f32 0.0078125, %v367_v49  ;;  %v420_v57 = vmul.f32 %v1806_v46, %v1806_v46  ;;  %v575_v48 = vld [vmem:[#allocation5 + $0x30] sm:$0xff] }
  0xf2   : > { %1163 = vmatprep.subr.mxu0 %v575_v48 }
  0xf3   : > { %v1813_v55 = vsub.f32 %v1743_v8, %v389_v51  ;;  %439 = vadd.xlane.f32.xlu1 %v418_v47  ;;  %441 = vadd.xlane.f32.xlu0 %v419_v52  ;;  %v1816_v56 = vsub.f32 %v1746_v9, %v390_v53  ;;  %v573_v51 = vld [vmem:[#allocation5 + $0x20] sm:$0xff]  ;;  %v572_v52 = vld [vmem:[#allocation5 + $0x18] sm:$0xff]  ;;  %v571_v53 = vld [vmem:[#allocation5 + $0x10] sm:$0xff] }
  0xf4   : > { %v369_v58 = vpop.xlane.xlu0 %368  ;;  %v371_v59 = vpop.xlane.xlu1 %370  ;;  %1164 = vmatpush3.msra.mxu0 %v575_v48 }
  0xf5   : > { %v391_v60 = vmul.f32 0.0078125, %v369_v58  ;;  %v421_v61 = vmul.f32 %v1813_v55, %v1813_v55  ;;  %v392_v62 = vmul.f32 0.0078125, %v371_v59  ;;  %v422_v18 = vmul.f32 %v1816_v56, %v1816_v56  ;;  %1165 = vmatprep.subr.mxu0 %v574_v50  ;;  %v767_v58 = vld [vmem:[#allocation7 + $0x78] sm:$0xff]  ;;  %v766_v59 = vld [vmem:[#allocation7 + $0x70] sm:$0xff] }
  0xf6   : > { %1166 = vmatpush3.msra.mxu0 %v574_v50  ;;  %1201 = vmatprep.subr.mxu1 %v767_v58 }
  0xf7   : > { %v1823_v16 = vsub.f32 %v1751_v10, %v391_v60  ;;  %443 = vadd.xlane.f32.xlu1 %v420_v57  ;;  %445 = vadd.xlane.f32.xlu0 %v421_v61  ;;  %v1826_v17 = vsub.f32 %v1754_v11, %v392_v62  ;;  %v569_v57 = vld [vmem:[#allocation5] sm:$0xff]  ;;  %v765_v60 = vld [vmem:[#allocation7 + $0x68] sm:$0xff]  ;;  %v763_v62 = vld [vmem:[#allocation7 + $0x58] sm:$0xff] }
  0xf8   : > { %v373_v20 = vpop.xlane.xlu0 %372  ;;  %v375_v21 = vpop.xlane.xlu1 %374  ;;  %1167 = vmatprep.subr.mxu0 %v573_v51  ;;  %1202 = vmatpush3.msra.mxu1 %v767_v58  ;;  %v764_v61 = vld [vmem:[#allocation7 + $0x60] sm:$0xff] }
  0xf9   : > { %v393_v24 = vmul.f32 0.0078125, %v373_v20  ;;  %v423_v25 = vmul.f32 %v1823_v16, %v1823_v16  ;;  %v394_v26 = vmul.f32 0.0078125, %v375_v21  ;;  %v424_v32 = vmul.f32 %v1826_v17, %v1826_v17  ;;  %1168 = vmatpush3.msra.mxu0 %v573_v51  ;;  %1203 = vmatprep.subr.mxu1 %v766_v59  ;;  %v759_v20 = vld [vmem:[#allocation7 + $0x38] sm:$0xff]  ;;  %v758_v21 = vld [vmem:[#allocation7 + $0x30] sm:$0xff] }
  0xfa   : > { %1169 = vmatprep.subr.mxu0 %v572_v52  ;;  %1204 = vmatpush3.msra.mxu1 %v766_v59 }
  0xfb   : > { %v1833_v28 = vsub.f32 %v1759_v12, %v393_v24  ;;  %447 = vadd.xlane.f32.xlu1 %v422_v18  ;;  %449 = vadd.xlane.f32.xlu0 %v423_v25  ;;  %v1836_v31 = vsub.f32 %v1762_v13, %v394_v26  ;;  %v761_v18 = vld [vmem:[#allocation7 + $0x48] sm:$0xff]  ;;  %v756_v25 = vld [vmem:[#allocation7 + $0x20] sm:$0xff] }
  0xfc   : > { %v377_v34 = vpop.xlane.xlu0 %376  ;;  %v379_v35 = vpop.xlane.xlu1 %378  ;;  %1170 = vmatpush3.msra.mxu0 %v572_v52  ;;  %1205 = vmatprep.subr.mxu1 %v765_v60  ;;  %v757_v24 = vld [vmem:[#allocation7 + $0x28] sm:$0xff] }
  0xfd   : > { %v395_v36 = vmul.f32 0.0078125, %v377_v34  ;;  %v425_v39 = vmul.f32 %v1833_v28, %v1833_v28  ;;  %v396_v40 = vmul.f32 0.0078125, %v379_v35  ;;  %v426_v44 = vmul.f32 %v1836_v31, %v1836_v31  ;;  %1171 = vmatprep.subr.mxu0 %v571_v53  ;;  %1206 = vmatpush3.msra.mxu1 %v765_v60 }
  0xfe   : > { %1172 = vmatpush3.msra.mxu0 %v571_v53  ;;  %1207 = vmatprep.subr.mxu1 %v764_v61 }
  0xff   : > { %v1843_v42 = vsub.f32 %v1767_v14, %v395_v36  ;;  %451 = vadd.xlane.f32.xlu1 %v424_v32  ;;  %453 = vadd.xlane.f32.xlu0 %v425_v39  ;;  %v1846_v43 = vsub.f32 %v1770_v15, %v396_v40 }
 0x100   : > { %1173 = vmatprep.subr.mxu0 %v570_v54  ;;  %1208 = vmatpush3.msra.mxu1 %v764_v61 }
 0x101   : > { %v427_v47 = vmul.f32 %v1843_v42, %v1843_v42  ;;  %v428_v49 = vmul.f32 %v1846_v43, %v1846_v43  ;;  %1174 = vmatpush3.msra.mxu0 %v570_v54  ;;  %1209 = vmatprep.subr.mxu1 %v763_v62 }
 0x102   : > { %1175 = vmatprep.subr.mxu0 %v569_v57  ;;  %1210 = vmatpush3.msra.mxu1 %v763_v62 }
 0x103   : > { %455 = vadd.xlane.f32.xlu1 %v426_v44  ;;  %457 = vadd.xlane.f32.xlu0 %v427_v47 }
 0x104   : > { %1176 = vmatpush3.msra.mxu0 %v569_v57  ;;  %1211 = vmatprep.subr.mxu1 %v762_v63 }
 0x105   : > { %1212 = vmatpush3.msra.mxu1 %v762_v63 }
 0x106   : > { %1213 = vmatprep.subr.mxu1 %v761_v18 }
 0x107   : > { %459 = vadd.xlane.f32.xlu1 %v428_v49  ;;  %1214 = vmatpush3.msra.mxu1 %v761_v18  ;;  %v1857_v18 = vld [vmem:[%s2023_s1] ss:$0 sm:$0xff] }
 0x108   : > { %1215 = vmatprep.subr.mxu1 %v760_v19 }
 0x109   : > { %1216 = vmatpush3.msra.mxu1 %v760_v19 }
 0x10a   : > { %1217 = vmatprep.subr.mxu1 %v759_v20 }
 0x10b   : > { %1218 = vmatpush3.msra.mxu1 %v759_v20 }
 0x10c   : > { %1219 = vmatprep.subr.mxu1 %v758_v21 }
 0x10d   : > { %1220 = vmatpush3.msra.mxu1 %v758_v21 }
 0x10e   : > { %1221 = vmatprep.subr.mxu1 %v757_v24 }
 0x10f   : > { %1222 = vmatpush3.msra.mxu1 %v757_v24 }
 0x110   : > { %1223 = vmatprep.subr.mxu1 %v756_v25 }
 0x111   : > { %1224 = vmatpush3.msra.mxu1 %v756_v25 }
 0x170   : > { %v430_v26 = vpop.xlane.xlu0 %429 }
 0x171   : > { %v461_v27 = vmul.f32 0.0078125, %v430_v26  ;;  %v1863_v26 = vld [vmem:[%s2024_s2] ss:$0 sm:$0xff] }
 0x173   : > { %v477_v32 = vadd.f32 1e-05, %v461_v27 }
 0x174   : > { %v432_v33 = vpop.xlane.xlu1 %431  ;;  %v434_v34 = vpop.xlane.xlu0 %433 }
 0x175   : > { %1328 = vrsqrt.f32 %v477_v32  ;;  %v462_v35 = vmul.f32 0.0078125, %v432_v33  ;;  %v463_v36 = vmul.f32 0.0078125, %v434_v34 }
 0x177   : > { %v478_v39 = vadd.f32 1e-05, %v462_v35  ;;  %v479_v40 = vadd.f32 1e-05, %v463_v36 }
 0x178   : > { %v436_v41 = vpop.xlane.xlu1 %435  ;;  %v438_v44 = vpop.xlane.xlu0 %437 }
 0x179   : > { %1330 = vrsqrt.f32 %v478_v39  ;;  %v464_v47 = vmul.f32 0.0078125, %v436_v41  ;;  %v465_v48 = vmul.f32 0.0078125, %v438_v44 }
 0x17a   : > { %1332 = vrsqrt.f32 %v479_v40 }
 0x17b   : > { %v480_v49 = vadd.f32 1e-05, %v464_v47  ;;  %v481_v50 = vadd.f32 1e-05, %v465_v48 }
 0x17c   : > { %v440_v51 = vpop.xlane.xlu1 %439  ;;  %v442_v52 = vpop.xlane.xlu0 %441 }
 0x17d   : > { %1334 = vrsqrt.f32 %v480_v49  ;;  %v466_v53 = vmul.f32 0.0078125, %v440_v51  ;;  %v467_v54 = vmul.f32 0.0078125, %v442_v52 }
 0x17e   : > { %1336 = vrsqrt.f32 %v481_v50 }
 0x17f   : > { %v482_v57 = vadd.f32 1e-05, %v466_v53  ;;  %v483_v58 = vadd.f32 1e-05, %v467_v54 }
 0x180   : > { %v444_v59 = vpop.xlane.xlu1 %443  ;;  %v446_v60 = vpop.xlane.xlu0 %445 }
 0x181   : > { %1338 = vrsqrt.f32 %v482_v57  ;;  %v468_v61 = vmul.f32 0.0078125, %v444_v59  ;;  %v469_v62 = vmul.f32 0.0078125, %v446_v60 }
 0x182   : > { %v1329_v63 = vpop.eup %1328  ;;  %1340 = vrsqrt.f32 %v483_v58 }
 0x183   : > { %v484_v19 = vadd.f32 1e-05, %v468_v61  ;;  %v485_v20 = vadd.f32 1e-05, %v469_v62  ;;  %v509_v21 = vmul.f32 %v1329_v63, %v1775_v22 }
 0x184   : > { %v448_v24 = vpop.xlane.xlu1 %447  ;;  %v450_v25 = vpop.xlane.xlu0 %449 }
 0x185   : > { %1342 = vrsqrt.f32 %v484_v19  ;;  %v470_v27 = vmul.f32 0.0078125, %v448_v24  ;;  %v471_v32 = vmul.f32 0.0078125, %v450_v25  ;;  %v531_v33 = vmul.f32 %v1857_v18, %v509_v21 }
 0x186   : > { %v1331_v34 = vpop.eup %1330  ;;  %1344 = vrsqrt.f32 %v485_v20 }
 0x187   : > { %v1333_v35 = vpop.eup %1332  ;;  %v486_v36 = vadd.f32 1e-05, %v470_v27  ;;  %v487_v39 = vadd.f32 1e-05, %v471_v32  ;;  %v553_v40 = vadd.f32 %v1863_v26, %v531_v33  ;;  %v510_v22 = vmul.f32 %v1331_v34, %v1783_v29 }
 0x188   : > { %v452_v41 = vpop.xlane.xlu1 %451  ;;  %v454_v44 = vpop.xlane.xlu0 %453  ;;  %v511_v47 = vmul.f32 %v1333_v35, %v1778_v23 }
 0x189   : > { %1346 = vrsqrt.f32 %v486_v36  ;;  %v472_v48 = vmul.f32 0.0078125, %v452_v41  ;;  %v473_v49 = vmul.f32 0.0078125, %v454_v44  ;;  %1177 = vmatprep.mubr.f32.mxu0 %v553_v40  ;;  %v532_v50 = vmul.f32 %v1857_v18, %v510_v22 }
 0x18a   : > { %v1335_v51 = vpop.eup %1334  ;;  %1348 = vrsqrt.f32 %v487_v39  ;;  %v533_v52 = vmul.f32 %v1857_v18, %v511_v47 }
 0x18b   : > { %v1337_v53 = vpop.eup %1336  ;;  %v488_v54 = vadd.f32 1e-05, %v472_v48  ;;  %v489_v57 = vadd.f32 1e-05, %v473_v49  ;;  %v554_v58 = vadd.f32 %v1863_v26, %v532_v50  ;;  %v512_v29 = vmul.f32 %v1335_v51, %v1786_v30 }
 0x18c   : > { %v456_v59 = vpop.xlane.xlu1 %455  ;;  %v458_v60 = vpop.xlane.xlu0 %457  ;;  %v555_v23 = vadd.f32 %v1863_v26, %v533_v52  ;;  %v513_v61 = vmul.f32 %v1337_v53, %v1793_v37 }
 0x18d   : > { %1350 = vrsqrt.f32 %v488_v54  ;;  %v474_v62 = vmul.f32 0.0078125, %v456_v59  ;;  %v475_v63 = vmul.f32 0.0078125, %v458_v60  ;;  %1178 = vmatmul.mubr.f32.vlgmr.msra.gmra.mxu0 %v554_v58  ;;  %v534_v19 = vmul.f32 %v1857_v18, %v512_v29 }
 0x18e   : > { %v1339_v20 = vpop.eup %1338  ;;  %1352 = vrsqrt.f32 %v489_v57  ;;  %1180 = vmatprep.mubr.f32.mxu0 %v555_v23  ;;  %v535_v21 = vmul.f32 %v1857_v18, %v513_v61 }
 0x18f   : > { %v1341_v24 = vpop.eup %1340  ;;  %v490_v25 = vadd.f32 1e-05, %v474_v62  ;;  %v491_v30 = vadd.f32 1e-05, %v475_v63  ;;  %v556_v27 = vadd.f32 %v1863_v26, %v534_v19  ;;  %v514_v32 = vmul.f32 %v1339_v20, %v1796_v38 }
 0x190   : > { %v460_v33 = vpop.xlane.xlu1 %459  ;;  %v557_v37 = vadd.f32 %v1863_v26, %v535_v21  ;;  %v515_v34 = vmul.f32 %v1341_v24, %v1803_v45 }
 0x191   : > { %1354 = vrsqrt.f32 %v490_v25  ;;  %v476_v35 = vmul.f32 0.0078125, %v460_v33  ;;  %1181 = vmatmul.mubr.f32.gmra.mxu0 %v556_v27  ;;  %v536_v36 = vmul.f32 %v1857_v18, %v514_v32 }
 0x192   : > { %v1343_v39 = vpop.eup %1342  ;;  %1356 = vrsqrt.f32 %v491_v30  ;;  %1183 = vmatprep.mubr.f32.mxu0 %v557_v37  ;;  %v537_v40 = vmul.f32 %v1857_v18, %v515_v34  ;;  %v754_v37 = vld [vmem:[#allocation7 + $0x10] sm:$0xff]  ;;  %v753_v34 = vld [vmem:[#allocation7 + $0x8] sm:$0xff] }
 0x193   : > { %v1345_v22 = vpop.eup %1344  ;;  %v492_v41 = vadd.f32 1e-05, %v476_v35  ;;  %v558_v44 = vadd.f32 %v1863_v26, %v536_v36  ;;  %v516_v38 = vmul.f32 %v1343_v39, %v1806_v46  ;;  %v752_v35 = vld [vmem:[#allocation7] sm:$0xff] }
 0x194   : > { %v559_v47 = vadd.f32 %v1863_v26, %v537_v40  ;;  %v517_v45 = vmul.f32 %v1345_v22, %v1813_v55 }
 0x195   : > { %1358 = vrsqrt.f32 %v492_v41  ;;  %1184 = vmatmul.mubr.f32.gmra.mxu0 %v558_v44  ;;  %v538_v48 = vmul.f32 %v1857_v18, %v516_v38 }
 0x196   : > { %v1347_v49 = vpop.eup %1346  ;;  %1186 = vmatprep.mubr.f32.mxu0 %v559_v47  ;;  %v539_v50 = vmul.f32 %v1857_v18, %v517_v45 }
 0x197   : > { %v1349_v51 = vpop.eup %1348  ;;  %v560_v52 = vadd.f32 %v1863_v26, %v538_v48  ;;  %v518_v53 = vmul.f32 %v1347_v49, %v1816_v56 }
 0x198   : > { %v561_v54 = vadd.f32 %v1863_v26, %v539_v50  ;;  %v519_v46 = vmul.f32 %v1349_v51, %v1823_v16 }
 0x199   : > { %1187 = vmatmul.mubr.f32.gmra.mxu0 %v560_v52  ;;  %v540_v55 = vmul.f32 %v1857_v18, %v518_v53 }
 0x19a   : > { %v1351_v57 = vpop.eup %1350  ;;  %1189 = vmatprep.mubr.f32.mxu0 %v561_v54  ;;  %v541_v58 = vmul.f32 %v1857_v18, %v519_v46 }
 0x19b   : > { %v1353_v29 = vpop.eup %1352  ;;  %v562_v59 = vadd.f32 %v1863_v26, %v540_v55  ;;  %v520_v60 = vmul.f32 %v1351_v57, %v1826_v17 }
 0x19c   : > { %v563_v23 = vadd.f32 %v1863_v26, %v541_v58  ;;  %v521_v56 = vmul.f32 %v1353_v29, %v1833_v28 }
 0x19d   : > { %1190 = vmatmul.mubr.f32.gmra.mxu0 %v562_v59  ;;  %v542_v61 = vmul.f32 %v1857_v18, %v520_v60 }
 0x19e   : > { %v1355_v16 = vpop.eup %1354  ;;  %1192 = vmatprep.mubr.f32.mxu0 %v563_v23  ;;  %v543_v62 = vmul.f32 %v1857_v18, %v521_v56 }
 0x19f   : > { %v1357_v63 = vpop.eup %1356  ;;  %v564_v19 = vadd.f32 %v1863_v26, %v542_v61  ;;  %v522_v20 = vmul.f32 %v1355_v16, %v1836_v31 }
 0x1a0   : > { %v565_v21 = vadd.f32 %v1863_v26, %v543_v62  ;;  %v523_v17 = vmul.f32 %v1357_v63, %v1843_v42  ;;  %v755_v42 = vld [vmem:[#allocation7 + $0x18] sm:$0xff] }
 0x1a1   : > { %1193 = vmatmul.mubr.f32.gmra.mxu0 %v564_v19  ;;  %v544_v24 = vmul.f32 %v1857_v18, %v522_v20  ;;  %1225 = vmatprep.subr.mxu1 %v755_v42 }
 0x1a2   : > { %v1359_v28 = vpop.eup %1358  ;;  %1195 = vmatprep.mubr.f32.mxu0 %v565_v21  ;;  %v545_v25 = vmul.f32 %v1857_v18, %v523_v17  ;;  %1226 = vmatpush3.msra.mxu1 %v755_v42 }
 0x1a3   : > { %v566_v30 = vadd.f32 %v1863_v26, %v544_v24  ;;  %v524_v27 = vmul.f32 %v1359_v28, %v1846_v43  ;;  %1227 = vmatprep.subr.mxu1 %v754_v37  ;;  %v1072_v43 = vld [vmem:[%s2026_s4] ss:$0 sm:$0xff] }
 0x1a4   : > { %v567_v32 = vadd.f32 %v1863_v26, %v545_v25  ;;  %1228 = vmatpush3.msra.mxu1 %v754_v37 }
 0x1a5   : > { %1196 = vmatmul.mubr.f32.gmra.mxu0 %v566_v30  ;;  %v546_v31 = vmul.f32 %v1857_v18, %v524_v27  ;;  %1229 = vmatprep.subr.mxu1 %v753_v34 }
 0x1a6   : > { %1198 = vmatprep.mubr.f32.mxu0 %v567_v32  ;;  %1230 = vmatpush3.msra.mxu1 %v753_v34 }
 0x1a7   : > { %v568_v33 = vadd.f32 %v1863_v26, %v546_v31  ;;  %1231 = vmatprep.subr.mxu1 %v752_v35 }
 0x1a8   : > { %1232 = vmatpush3.msra.mxu1 %v752_v35 }
 0x1a9   : > { %1199 = vmatmul.mubr.f32.gmra.mxu0 %v568_v33 }
 0x24d   : > { %v1179_v18 = vpop.f32.mrf.mxu0 }
 0x24e   : > { %v663_v36 = vadd.f32 %v1179_v18, %v1072_v43 }
 0x24f   : > { %v657_v26 = vpop.f32.mrf.mxu0 }
 0x250   : > { %v658_v39 = vadd.f32 %v1072_v43, %v657_v26  ;;  %v737_v41 = vmax.f32 %v663_v36, 0.0  ;;  %v1918_v36 = vld [vmem:[%s2028_s6] ss:$0 sm:$0xff] }
 0x251   : > { %v1182_v40 = vpop.f32.mrf.mxu0 }
 0x252   : > { %v736_v22 = vmax.f32 %v658_v39, 0.0  ;;  %v673_v44 = vadd.f32 %v1182_v40, %v1072_v43 }
 0x253   : > { %v667_v38 = vpop.f32.mrf.mxu0 }
 0x254   : > { %v668_v47 = vadd.f32 %v1072_v43, %v667_v38  ;;  %1233 = vmatprep.mubr.f32.mxu1 %v736_v22  ;;  %v739_v49 = vmax.f32 %v673_v44, 0.0 }
 0x255   : > { %v1185_v45 = vpop.f32.mrf.mxu0  ;;  %1234 = vmatmul.mubr.f32.vlgmr.msra.gmra.mxu1 %v737_v41 }
 0x256   : > { %v738_v48 = vmax.f32 %v668_v47, 0.0  ;;  %v683_v50 = vadd.f32 %v1185_v45, %v1072_v43 }
 0x257   : > { %v677_v51 = vpop.f32.mrf.mxu0 }
 0x258   : > { %v678_v52 = vadd.f32 %v1072_v43, %v677_v51  ;;  %1236 = vmatprep.mubr.f32.mxu1 %v738_v48  ;;  %v741_v46 = vmax.f32 %v683_v50, 0.0 }
 0x259   : > { %v1188_v53 = vpop.f32.mrf.mxu0  ;;  %1237 = vmatmul.mubr.f32.gmra.mxu1 %v739_v49 }
 0x25a   : > { %v740_v54 = vmax.f32 %v678_v52, 0.0  ;;  %v693_v55 = vadd.f32 %v1188_v53, %v1072_v43 }
 0x25b   : > { %v687_v57 = vpop.f32.mrf.mxu0 }
 0x25c   : > { %v688_v58 = vadd.f32 %v1072_v43, %v687_v57  ;;  %1239 = vmatprep.mubr.f32.mxu1 %v740_v54  ;;  %v743_v60 = vmax.f32 %v693_v55, 0.0 }
 0x25d   : > { %v1191_v29 = vpop.f32.mrf.mxu0  ;;  %1240 = vmatmul.mubr.f32.gmra.mxu1 %v741_v46 }
 0x25e   : > { %v742_v59 = vmax.f32 %v688_v58, 0.0  ;;  %v703_v23 = vadd.f32 %v1191_v29, %v1072_v43 }
 0x25f   : > { %v697_v56 = vpop.f32.mrf.mxu0 }
 0x260   : > { %v698_v61 = vadd.f32 %v1072_v43, %v697_v56  ;;  %1242 = vmatprep.mubr.f32.mxu1 %v742_v59  ;;  %v745_v63 = vmax.f32 %v703_v23, 0.0 }
 0x261   : > { %v1194_v16 = vpop.f32.mrf.mxu0  ;;  %1243 = vmatmul.mubr.f32.gmra.mxu1 %v743_v60 }
 0x262   : > { %v744_v62 = vmax.f32 %v698_v61, 0.0  ;;  %v713_v19 = vadd.f32 %v1194_v16, %v1072_v43 }
 0x263   : > { %v707_v20 = vpop.f32.mrf.mxu0 }
 0x264   : > { %v708_v21 = vadd.f32 %v1072_v43, %v707_v20  ;;  %1245 = vmatprep.mubr.f32.mxu1 %v744_v62  ;;  %v747_v28 = vmax.f32 %v713_v19, 0.0 }
 0x265   : > { %v1197_v17 = vpop.f32.mrf.mxu0  ;;  %1246 = vmatmul.mubr.f32.gmra.mxu1 %v745_v63 }
 0x266   : > { %v746_v24 = vmax.f32 %v708_v21, 0.0  ;;  %v723_v25 = vadd.f32 %v1197_v17, %v1072_v43 }
 0x267   : > { %v717_v30 = vpop.f32.mrf.mxu0 }
 0x268   : > { %v718_v27 = vadd.f32 %v1072_v43, %v717_v30  ;;  %1248 = vmatprep.mubr.f32.mxu1 %v746_v24  ;;  %v749_v33 = vmax.f32 %v723_v25, 0.0 }
 0x269   : > { %v1200_v32 = vpop.f32.mrf.mxu0  ;;  %1249 = vmatmul.mubr.f32.gmra.mxu1 %v747_v28 }
 0x26a   : > { %v748_v31 = vmax.f32 %v718_v27, 0.0  ;;  %v733_v42 = vadd.f32 %v1200_v32, %v1072_v43 }
 0x26b   : > { %v727_v37 = vpop.f32.mrf.mxu0 }
 0x26c   : > { %v728_v34 = vadd.f32 %v1072_v43, %v727_v37  ;;  %1251 = vmatprep.mubr.f32.mxu1 %v748_v31  ;;  %v751_v18 = vmax.f32 %v733_v42, 0.0 }
 0x26d   : > { %1252 = vmatmul.mubr.f32.gmra.mxu1 %v749_v33 }
 0x26e   : > { %v750_v35 = vmax.f32 %v728_v34, 0.0 }
 0x270   : > { %1254 = vmatprep.mubr.f32.mxu1 %v750_v35 }
 0x271   : > { %1255 = vmatmul.mubr.f32.gmra.mxu1 %v751_v18 }
 0x315   : > { %v1235_v26 = vpop.f32.mrf.mxu1 }
 0x316   : > { %v846_v39 = vadd.f32 %v1235_v26, %v1918_v36 }
 0x317   : > { %v840_v40 = vpop.f32.mrf.mxu1 }
 0x318   : > { %v920_v22 = vadd.f32 %v846_v39, %v1719_v2  ;;  %v841_v41 = vadd.f32 %v1918_v36, %v840_v40 }
 0x319   : > { %v1238_v43 = vpop.f32.mrf.mxu1 }
 0x31a   : > { %936 = vst [vmem:[%s1925_s14 + $0x8] sm:$0xff] %v920_v22  ;;  %v919_v44 = vadd.f32 %v841_v41, %v1711_v0  ;;  %v856_v38 = vadd.f32 %v1238_v43, %v1918_v36 }
 0x31b   : > { %v850_v47 = vpop.f32.mrf.mxu1 }
 0x31c   : > { %935 = vst [vmem:[%s1925_s14] sm:$0xff] %v919_v44  ;;  %v922_v2 = vadd.f32 %v856_v38, %v1722_v3  ;;  %v851_v45 = vadd.f32 %v1918_v36, %v850_v47 }
 0x31d   : > { %v1241_v48 = vpop.f32.mrf.mxu1 }
 0x31e   : > { %938 = vst [vmem:[%s1925_s14 + $0x18] sm:$0xff] %v922_v2  ;;  %v921_v49 = vadd.f32 %v851_v45, %v1714_v1  ;;  %v866_v50 = vadd.f32 %v1241_v48, %v1918_v36 }
 0x31f   : > { %v860_v51 = vpop.f32.mrf.mxu1 }
 0x320   : > { %937 = vst [vmem:[%s1925_s14 + $0x10] sm:$0xff] %v921_v49  ;;  %v924_v0 = vadd.f32 %v866_v50, %v1730_v5  ;;  %v861_v52 = vadd.f32 %v1918_v36, %v860_v51 }
 0x321   : > { %v1244_v53 = vpop.f32.mrf.mxu1 }
 0x322   : > { %940 = vst [vmem:[%s1925_s14 + $0x28] sm:$0xff] %v924_v0  ;;  %v923_v3 = vadd.f32 %v861_v52, %v1727_v4  ;;  %v876_v54 = vadd.f32 %v1244_v53, %v1918_v36 }
 0x323   : > { %v870_v46 = vpop.f32.mrf.mxu1 }
 0x324   : > { %939 = vst [vmem:[%s1925_s14 + $0x20] sm:$0xff] %v923_v3  ;;  %v926_v1 = vadd.f32 %v876_v54, %v1738_v7  ;;  %v871_v55 = vadd.f32 %v1918_v36, %v870_v46 }
 0x325   : > { %v1247_v57 = vpop.f32.mrf.mxu1 }
 0x326   : > { %942 = vst [vmem:[%s1925_s14 + $0x38] sm:$0xff] %v926_v1  ;;  %v925_v5 = vadd.f32 %v871_v55, %v1735_v6  ;;  %v886_v58 = vadd.f32 %v1247_v57, %v1918_v36 }
 0x327   : > { %v880_v29 = vpop.f32.mrf.mxu1 }
 0x328   : > { %941 = vst [vmem:[%s1925_s14 + $0x30] sm:$0xff] %v925_v5  ;;  %v928_v4 = vadd.f32 %v886_v58, %v1746_v9  ;;  %v881_v59 = vadd.f32 %v1918_v36, %v880_v29 }
 0x329   : > { %v1250_v60 = vpop.f32.mrf.mxu1 }
 0x32a   : > { %944 = vst [vmem:[%s1925_s14 + $0x48] sm:$0xff] %v928_v4  ;;  %v927_v7 = vadd.f32 %v881_v59, %v1743_v8  ;;  %v896_v23 = vadd.f32 %v1250_v60, %v1918_v36 }
 0x32b   : > { %v890_v56 = vpop.f32.mrf.mxu1 }
 0x32c   : > { %943 = vst [vmem:[%s1925_s14 + $0x40] sm:$0xff] %v927_v7  ;;  %v930_v6 = vadd.f32 %v896_v23, %v1754_v11  ;;  %v891_v61 = vadd.f32 %v1918_v36, %v890_v56 }
 0x32d   : > { %v1253_v16 = vpop.f32.mrf.mxu1 }
 0x32e   : > { %946 = vst [vmem:[%s1925_s14 + $0x58] sm:$0xff] %v930_v6  ;;  %v929_v9 = vadd.f32 %v891_v61, %v1751_v10  ;;  %v906_v62 = vadd.f32 %v1253_v16, %v1918_v36 }
 0x32f   : > { %v900_v63 = vpop.f32.mrf.mxu1 }
 0x330   : > { %945 = vst [vmem:[%s1925_s14 + $0x50] sm:$0xff] %v929_v9  ;;  %v932_v8 = vadd.f32 %v906_v62, %v1762_v13  ;;  %v901_v19 = vadd.f32 %v1918_v36, %v900_v63 }
 0x331   : > { %v1256_v20 = vpop.f32.mrf.mxu1 }
 0x332   : > { %948 = vst [vmem:[%s1925_s14 + $0x68] sm:$0xff] %v932_v8  ;;  %v931_v11 = vadd.f32 %v901_v19, %v1759_v12  ;;  %v916_v21 = vadd.f32 %v1256_v20, %v1918_v36 }
 0x333   : > { %v910_v10 = vpop.f32.mrf.mxu1 }
 0x334   : > { %947 = vst [vmem:[%s1925_s14 + $0x60] sm:$0xff] %v931_v11  ;;  %v934_v17 = vadd.f32 %v916_v21, %v1770_v15  ;;  %v911_v24 = vadd.f32 %v1918_v36, %v910_v10 }
 0x336   : > { %950 = vst [vmem:[%s1925_s14 + $0x78] sm:$0xff] %v934_v17  ;;  %v933_v12 = vadd.f32 %v911_v24, %v1767_v14 }
 0x338   : > { %949 = vst [vmem:[%s1925_s14 + $0x70] sm:$0xff] %v933_v12 }
 0x339   : > { %1453 = shalt.err (!%p1450_p3)
}
 0x33a   : > { %s1454_s29 = scalar_lea.hbm %s1974_s10, 2048  ;;  %s1458_s13 = scalar_lea.hbm %s2029_s7, 4096 }
 0x33b   : > { %p1455_p11 = scmp.ne.s32.totalorder %s1974_s10, %s1454_s29  ;;  %p1459_p4 = scmp.lt.s32.totalorder %s1974_s10, %s2029_s7 }
 0x33c   : > { %p1460_p6 = scmp.lt.s32.totalorder %s1458_s13, %s1454_s29 }
 0x33d   : > { %p1456_p9 = pnand %p1455_p11, %p2050_p2 }
 0x33e   : > { %p1461_p8 = por %p1460_p6, %p1459_p4 }
 0x33f   : > { %p1457_p1 = pneg %p1456_p9 }
 0x341   : > { %p1462_p5 = pnand %p1461_p8, %p1457_p1 }
 0x343   : > { %1465 = shalt.err (!%p1462_p5)
}
 0x344   : > { %s1516_s3 = smov 128   ;;  %s1517_s15 = smov 8  }
 0x345   : > { %1267 = dma.vmem_to_hbm [thread:$0]  (%p2050_p2), %s1976_s18, 2048, %s1974_s10, %s952_s28, %s1516_s3, %s1516_s3, %s1517_s15  }
 0x346 PF: > { %s980_s30 = sand.u32 1, %s1496_s24   ;;  %p2051_p7 = scmp.ne.s32.totalorder %s2038_s8, 0 }
 0x347   : > { %p2052_p12 = scmp.ge.s32.totalorder %s1508_s27, 2  ;;  %s981_s9 = scalar_lea.sflag [#allocation4], %s980_s30 }
 0x349   : > { %p1281_p13 = pnand %p2052_p12, %p2051_p7 }
 0x34b   : > { %p1282_p0 = pneg %p1281_p13 }
 0x34d   : > { %1491 = dma.done.wait (%p1282_p0), %s981_s9, 2048  }
 0x34e   : > { %1493 = vsyncadd (%p1282_p0), %s981_s9, 4294965248  ;;  %p21_p10 = scmp.ge.s32.totalorder %s1636_s23, 4   ;;  %s2053_s24 = smov %s1500_s25 }
 0x34f   : > { %s2054_s25 = smov %s1504_s26  ;;  %s2055_s26 = smov %s1652_s12 }
 0x350   : > { %s2056_s27 = smov %s1636_s23  ;;  %23 = sbr.rel (!%p21_p10) target bundleno = 8 (0x8), region = 101 }
 0x355   :  { %986 = vsyncpa [#allocation3], 1 }
 0x356   :  { %988 = vsyncpa [#allocation3 + $0x1], 1 }
 0x357   :  { %989 = vsyncpa [#allocation6], 1 }
 0x358   :  { %990 = vsyncpa [#allocation4], 1 }
 0x359   :  { %992 = vsyncpa [#allocation4 + $0x1], 1 }

</bundles_post_ra>
